<compile_context>
chip_gen: v5e
topology: v5e:2x2
jax: 0.10.0
libtpu: 0.0.40
codegen_flags: <defaults>
</compile_context>

<pallas_src>
import math

import jax
import jax.numpy as jnp
from jax.experimental import pallas as pl
from jax.experimental.pallas import tpu as pltpu

_TARGET_BLOCK_BYTES = 8 << 20   # ~8 MiB per block: v7x-safe with double buffering
_MAX_LANE_WIDTH = 4096          # cap on the lane-dense last dimension


def _identity_kernel(h_ref, o_ref):
    # Straight tile copy: hidden_states -> output (identity forward).
    o_ref[...] = h_ref[...]


def _lane_dense_shape(n_elems: int, M: int, D: int):
    """Pick a 2-D (rows, cols) view with cols a large multiple of 128 when possible."""
    if n_elems % 128 == 0:
        cols = 128
        while cols * 2 <= _MAX_LANE_WIDTH and n_elems % (cols * 2) == 0:
            cols *= 2
        return n_elems // cols, cols
    # Fallback: keep the original (M, D) view; full-D blocks still satisfy the
    # (8,128) rule because the last block dim equals the full array dim.
    return M, D


def _choose_row_tile(rows: int, row_bytes: int) -> int:
    """Byte-targeted row tile (multiple of 8), guaranteeing >=2 grid steps when possible."""
    tm = max(8, (_TARGET_BLOCK_BYTES // max(row_bytes, 1)) // 8 * 8)
    if rows >= 16:
        # Ensure at least two grid steps so both v7x TensorCores get work and
        # the input/output DMAs of successive steps can overlap.
        half = ((-(-rows // 2)) + 7) // 8 * 8
        tm = min(tm, half)
    if tm >= rows:
        return rows
    return tm


def _pallas_identity_copy(x):
    """Tiled, lane-dense identity copy through VMEM (used only when a fresh buffer is needed)."""
    orig_shape = x.shape
    n_elems = int(math.prod(orig_shape)) if orig_shape else 1
    D = orig_shape[-1] if len(orig_shape) >= 1 else 1
    M = n_elems // max(D, 1)

    rows, cols = _lane_dense_shape(n_elems, M, D)
    x2d = x.reshape(rows, cols)

    itemsize = jnp.dtype(x.dtype).itemsize
    row_bytes = cols * itemsize
    tm = _choose_row_tile(rows, row_bytes)
    grid = (pl.cdiv(rows, tm),)

    block_bytes = tm * cols * itemsize
    # double-buffered input + double-buffered output + slack; safe on v7x (64 MiB)
    vmem_limit = max(4 * block_bytes + (1 << 20), 4 << 20)

    out2d = pl.pallas_call(
        _identity_kernel,
        out_shape=jax.ShapeDtypeStruct((rows, cols), x.dtype),
        grid_spec=pltpu.PrefetchScalarGridSpec(
            num_scalar_prefetch=0,
            grid=grid,
            in_specs=[pl.BlockSpec((tm, cols), lambda i: (i, 0))],
            out_specs=pl.BlockSpec((tm, cols), lambda i: (i, 0)),
        ),
        compiler_params=pltpu.CompilerParams(
            dimension_semantics=("parallel",),
            vmem_limit_bytes=vmem_limit,
        ),
        cost_estimate=pl.CostEstimate(
            flops=0,
            transcendentals=0,
            bytes_accessed=2 * n_elems * itemsize,
        ),
    )(x2d)
    return out2d.reshape(orig_shape)


def mbart_identity(hidden_states, attention_mask=None, layer_head_mask=None,
                   output_attentions: bool = False, force_copy: bool = False):
    """Pallas equivalent of mBARTIdentity.forward: returns [hidden_states].

    attention_mask / layer_head_mask / output_attentions are accepted purely
    for API compatibility with the mBART layer signature and are ignored,
    exactly like the PyTorch module.

    Default path launches no kernel at all (zero HBM traffic, zero launch
    overhead).  Set force_copy=True only if a distinct output buffer is
    genuinely required downstream.
    """
    del attention_mask, layer_head_mask, output_attentions  # unused by design
    if not force_copy:
        return [hidden_states]
    return [_pallas_identity_copy(hidden_states)]


if __name__ == "__main__":
    key = jax.random.PRNGKey(0)
    k1, k2, k3 = jax.random.split(key, 3)

    # Small shapes consistent with an mBART encoder layer call.
    batch, seq, hidden, heads = 2, 8, 32, 4
    hidden_states = jax.random.normal(k1, (batch, seq, hidden), jnp.float32)
    attention_mask = jnp.zeros((batch, 1, seq, seq), jnp.float32)   # ignored
    layer_head_mask = jnp.ones((heads,), jnp.float32)               # ignored

    # 1) Default (recommended) path: pure passthrough, no kernel launch.
    out_list = mbart_identity(hidden_states, attention_mask, layer_head_mask,
                              output_attentions=False)
    assert isinstance(out_list, list) and len(out_list) == 1
    out = jax.block_until_ready(out_list[0])
    assert out.shape == hidden_states.shape
    assert bool(jnp.array_equal(out, hidden_states)), "passthrough mismatch"

    # 2) Forced-copy path: exercises the Pallas kernel (lane-dense re-tiling:
    #    2*8*32 = 512 elements -> (4, 128) slab).
    out_copy = mbart_identity(hidden_states, attention_mask, layer_head_mask,
                              force_copy=True)[0]
    out_copy = jax.block_until_ready(out_copy)
    assert out_copy.shape == hidden_states.shape
    assert bool(jnp.array_equal(out_copy, hidden_states)), "copy-kernel mismatch"

    # 3) A moderately larger input to exercise a multi-step ("parallel") grid.
    big = jax.random.normal(k2, (4, 128, 256), jnp.float32)
    big_copy = jax.block_until_ready(_pallas_identity_copy(big))
    assert big_copy.shape == big.shape
    assert bool(jnp.array_equal(big_copy, big)), "multi-step copy mismatch"

    print("KERNEL_OK")
</pallas_src>

<mosaic_0001>
module attributes {stable_mosaic.version = 11 : i64} {
  func.func @_identity_kernel(%arg0: i32, %arg1: memref<1x512xf32, #tpu.memory_space<vmem>>, %arg2: memref<1x512xf32, #tpu.memory_space<vmem>>) attributes {dimension_semantics = [#tpu.dimension_semantics<parallel>], iteration_bounds = array<i64: 1>, scalar_prefetch = 0 : i64, scratch_operands = 0 : i64, tpu.core_type = #tpu.core_type<tc>, window_params = [{transform_indices = @transform_0, window_bounds = array<i64: 1, 512>}, {transform_indices = @transform_1, window_bounds = array<i64: 1, 512>}]} {
    %c0 = arith.constant 0 : index
    %c0_0 = arith.constant 0 : index
    %0 = vector.load %arg1[%c0, %c0_0] : memref<1x512xf32, #tpu.memory_space<vmem>>, vector<1x512xf32>
    %c0_1 = arith.constant 0 : index
    %c0_2 = arith.constant 0 : index
    %1 = vector.load %arg2[%c0_1, %c0_2] : memref<1x512xf32, #tpu.memory_space<vmem>>, vector<1x512xf32>
    tpu.vector_store %arg2[%c0_1, %c0_2], %0 {strides = array<i32>} : memref<1x512xf32, #tpu.memory_space<vmem>>, vector<1x512xf32>,
    return
  }
  func.func @transform_0(%arg0: i32) -> (i32, i32) {
    %c0_i32 = arith.constant 0 : i32
    %c0_i32_0 = arith.constant 0 : i32
    return %arg0, %c0_i32 : i32, i32
  }
  func.func @transform_1(%arg0: i32) -> (i32, i32) {
    %c0_i32 = arith.constant 0 : i32
    %c0_i32_0 = arith.constant 0 : i32
    return %arg0, %c0_i32 : i32, i32
  }
}

</mosaic_0001>

<bundles_post_ra>
// kernel: tpu_custom_call.1
= control target key start
LH: loop header
LB: loop body
LE: loop exit
PB: predicated region body
PF: predicated region fallthrough
CT: control target
= control target key end

     0   :  { %6 = vsyncpa [#allocation3], 0  ;;  %s118_s0 = inlined_call_operand.hbm [shape: f32[1,512], index: 0, kind: input, shape index: {}]   ;;  %s119_s1 = inlined_call_operand.hbm [shape: f32[1,512], index: 1, kind: output, shape index: {}]  }
   0x1   :  { %7 = vsyncpa [#allocation4], 0  ;;  %s13_s8 = sshll.u32 %s118_s0, 4  ;;  %s100_s9 = smov [#allocation2]   ;;  %s14_s8 = int_to_ptr.hbm [resolvable:$true] %s13_s8 }
   0x2   :  { %s15_s10 = sshll.u32 %s100_s9, 4  ;;  %s16_s10 = int_to_ptr.vmem [resolvable:$true] %s15_s10 }
   0x3   :  { %18 = dma.hbm_to_vmem [thread:$0]  %s14_s8, 64, %s16_s10, [#allocation3]  }
   0x4   :  { %96 = dma.done.wait [#allocation3], 64  }
   0x5   :  { %97 = vsyncadd [#allocation3], 4294967232  ;;  %v24_v0 = vlaneseq  ;;  %s101_s11 = smov [#allocation5]   ;;  %s36_s15 = sshll.u32 %s119_s1, 4  ;;  %v23_v1 = vld [vmem:[#allocation2] sm:$0xf]  ;;  %s37_s15 = int_to_ptr.hbm [resolvable:$true] %s36_s15 }
   0x6   :  { %s34_s12 = sshll.u32 %s101_s11, 4  ;;  %s35_s12 = int_to_ptr.vmem [resolvable:$true] %s34_s12 }
   0x7   :  { %vm26_vm0 = vcmp.lt.s32.totalorder %v24_v0, 512 }
   0x8   :  { %28 = vst.msk [vmem:[#allocation5] sm:$0xf] %vm26_vm0, %v23_v1 }
   0x9   :  { %39 = dma.vmem_to_hbm [thread:$0]  %s35_s12, 64, %s37_s15, [#allocation4]  }
   0xa   :  { %98 = dma.done.wait [#allocation4], 64  }
   0xb   :  { %99 = vsyncadd [#allocation4], 4294967232 }
   0xc   :  { %44 = vsyncpa [#allocation3], 1 }
   0xd   :  { %45 = vsyncpa [#allocation4], 1 }

</bundles_post_ra>
